<compile_context>
chip_gen: v5e
topology: v5e:2x2
jax: 0.10.0
libtpu: 0.0.40
codegen_flags: <defaults>
</compile_context>

<pallas_src>
import functools

import jax
import jax.numpy as jnp
import numpy as np
from jax import lax
from jax.experimental import pallas as pl
from jax.experimental.pallas import tpu as pltpu


# -----------------------------------------------------------------------------
# Fused kernel: conv1+relu -> conv2+relu -> conv3 -> softmax(W) -> * x1
# One grid step processes `bB` batch elements, fully lane-dense.
# -----------------------------------------------------------------------------
def _attention3_kernel(x_ref, bw1_ref, b1_ref, bw2_ref, b2_ref, bw3_ref,
                       b3_ref, o_ref, *, H, W, Cout, bB, mxu_dtype):
    M = bB * H            # rows per grid step (sublane axis)
    WC = W * Cout         # lane-dense width of every intermediate

    # Edge masks for the H-direction halo: the rolled "row above / below" is
    # invalid (wraps into another image) at h == 0 / h == H-1.
    row = lax.broadcasted_iota(jnp.int32, (M, 1), 0)
    h = row % H
    has_above = h != 0
    has_below = h != (H - 1)

    def conv3x3(a, bw_ref, b_ref):
        """a: (M, K) lane-dense f32 rows.  bw_ref: (3, K, W*Cout) banded taps."""
        a_up = jnp.where(has_above, pltpu.roll(a, shift=1, axis=0), 0.0)
        a_dn = jnp.where(has_below, pltpu.roll(a, shift=M - 1, axis=0), 0.0)
        y = jnp.dot(a_up.astype(mxu_dtype), bw_ref[0],
                    preferred_element_type=jnp.float32)
        y += jnp.dot(a.astype(mxu_dtype), bw_ref[1],
                     preferred_element_type=jnp.float32)
        y += jnp.dot(a_dn.astype(mxu_dtype), bw_ref[2],
                     preferred_element_type=jnp.float32)
        return y + b_ref[...]                                # (M, WC) f32

    def reduce_over_w(v, is_max):
        """Reduce over w of lane-dense (M, W*Cout); result broadcast back."""
        comb = jnp.maximum if is_max else jnp.add
        if W & (W - 1) == 0:
            # Stride-Cout lane butterfly: the wrap is exact because the lane
            # extent is exactly W*Cout.  Runs on the otherwise-idle XLU.
            s = Cout
            while s < WC:
                v = comb(v, pltpu.roll(v, shift=s, axis=1))
                s *= 2
            return v
        # Fallback for non power-of-two W (correct, but relayouts).
        vw = v.reshape(M, W, Cout)
        r = (jnp.max if is_max else jnp.sum)(vw, axis=1, keepdims=True)
        return jnp.broadcast_to(r, (M, W, Cout)).reshape(M, WC)

    x = x_ref[...].reshape(M, x_ref.shape[-1])               # (M, W*Cin)

    x1 = jnp.maximum(conv3x3(x, bw1_ref, b1_ref), 0.0)       # (M, WC) lane-dense
    x2 = jnp.maximum(conv3x3(x1, bw2_ref, b2_ref), 0.0)      # (M, WC)
    y3 = conv3x3(x2, bw3_ref, b3_ref)                        # (M, WC)

    # Softmax over the W axis (PyTorch softmax(dim=-1) on NCHW), exact divide.
    m = reduce_over_w(y3, is_max=True)
    e = jnp.exp(y3 - m)
    s = reduce_over_w(e, is_max=False)
    out = (e / s) * x1

    o_ref[...] = out.reshape(bB, H, WC).astype(o_ref.dtype)


# -----------------------------------------------------------------------------
# Wrapper helpers
# -----------------------------------------------------------------------------
def _banded_weights(w_hwio, W):
    """(3,3,Cin,Cout) HWIO -> (3, W*Cin, W*Cout) per-kh banded matrices.

    B[kh][s*Cin+ci, d*Cout+co] = w[kh, kw, ci, co] with s = d + kw - 1;
    out-of-range source columns are dropped (== zero padding in W).
    Built with an exact 0/1 select + sum (no dot) so no precision is lost.
    """
    kH, kW, Cin, Cout = w_hwio.shape
    s = np.arange(W)[:, None]
    d = np.arange(W)[None, :]
    sel = np.stack([(s == d + kw - 1) for kw in range(kW)]).astype(np.float32)
    sel = jnp.asarray(sel)                                    # (kW, W, W)
    prod = sel[None, :, :, None, :, None] * w_hwio[:, :, None, :, None, :]
    b = prod.sum(axis=1)                                      # (kH, W, Cin, W, Cout)
    return b.reshape(kH, W * Cin, W * Cout)


def _pick_block_b(B, block_b):
    if block_b is not None:
        if B % block_b != 0:
            raise ValueError(f"block_b={block_b} must divide B={B}")
        return block_b
    # Largest divisor of B that is <= 8 while keeping >= 2 grid steps, so both
    # v7x TensorCores get work whenever B >= 2.
    best = 1
    for cand in range(1, min(B, 8) + 1):
        if B % cand == 0 and (B == 1 or B // cand >= 2):
            best = cand
    return best


def attention3_forward_lane_dense(x_lane, params, *, W, use_bf16_mxu=False,
                                  block_b=None):
    """x_lane: (B, H, W*Cin) channels-minor lane-dense. Returns (B, H, W*Cout)."""
    w1, b1, w2, b2, w3, b3 = params
    B, H, WCin = x_lane.shape
    Cin = WCin // W
    Cout = w1.shape[-1]
    WC = W * Cout

    # bf16 MXU inputs are beneficial on v5e, v6e and v7x alike (bf16-native
    # MXUs); accumulation stays f32 via preferred_element_type.
    mxu_dtype = jnp.bfloat16 if use_bf16_mxu else jnp.float32

    bw1 = _banded_weights(w1, W).astype(mxu_dtype)            # (3, W*Cin, WC)
    bw2 = _banded_weights(w2, W).astype(mxu_dtype)            # (3, WC, WC)
    bw3 = _banded_weights(w3, W).astype(mxu_dtype)            # (3, WC, WC)
    b1r = jnp.tile(b1, W).reshape(1, WC).astype(jnp.float32)
    b2r = jnp.tile(b2, W).reshape(1, WC).astype(jnp.float32)
    b3r = jnp.tile(b3, W).reshape(1, WC).astype(jnp.float32)

    bB = _pick_block_b(B, block_b)
    grid = (B // bB,)

    kern = functools.partial(_attention3_kernel, H=H, W=W, Cout=Cout, bB=bB,
                             mxu_dtype=mxu_dtype)

    return pl.pallas_call(
        kern,
        out_shape=jax.ShapeDtypeStruct((B, H, WC), jnp.float32),
        grid=grid,
        in_specs=[
            pl.BlockSpec((bB, H, WCin), lambda i: (i, 0, 0)),
            pl.BlockSpec((3, WCin, WC), lambda i: (0, 0, 0)),
            pl.BlockSpec((1, WC), lambda i: (0, 0)),
            pl.BlockSpec((3, WC, WC), lambda i: (0, 0, 0)),
            pl.BlockSpec((1, WC), lambda i: (0, 0)),
            pl.BlockSpec((3, WC, WC), lambda i: (0, 0, 0)),
            pl.BlockSpec((1, WC), lambda i: (0, 0)),
        ],
        out_specs=pl.BlockSpec((bB, H, WC), lambda i: (i, 0, 0)),
        compiler_params=pltpu.CompilerParams(
            dimension_semantics=("parallel",)),
    )(x_lane, bw1, b1r, bw2, b2r, bw3, b3r)


def attention3_forward(x_nchw, params, *, use_bf16_mxu=False, block_b=None):
    """PyTorch-matching interface: (B, Cin, H, W) NCHW -> (B, Cout, H, W)."""
    B, Cin, H, W = x_nchw.shape
    Cout = params[0].shape[-1]
    # NCHW -> lane-dense (B, H, W*Cin).  These transposes are XLA-level HBM
    # round trips; skip them by calling attention3_forward_lane_dense if the
    # surrounding graph already uses the channels-minor layout.
    x_lane = jnp.transpose(x_nchw, (0, 2, 3, 1)).reshape(B, H, W * Cin)
    out = attention3_forward_lane_dense(x_lane, params, W=W,
                                        use_bf16_mxu=use_bf16_mxu,
                                        block_b=block_b)
    out = out.reshape(B, H, W, Cout)
    return jnp.transpose(out, (0, 3, 1, 2))


# -----------------------------------------------------------------------------
# Pure-JAX reference (for correctness check)
# -----------------------------------------------------------------------------
def _conv_ref(x_nhwc, w, b):
    y = lax.conv_general_dilated(
        x_nhwc, w, window_strides=(1, 1), padding="SAME",
        dimension_numbers=("NHWC", "HWIO", "NHWC"),
        precision=lax.Precision.HIGHEST)
    return y + b


def attention3_ref(x_nchw, params):
    w1, b1, w2, b2, w3, b3 = params
    x = jnp.transpose(x_nchw, (0, 2, 3, 1))
    x1 = jax.nn.relu(_conv_ref(x, w1, b1))
    x2 = jax.nn.relu(_conv_ref(x1, w2, b2))
    x3 = jax.nn.softmax(_conv_ref(x2, w3, b3), axis=2)  # W axis of NHWC
    out = x3 * x1
    return jnp.transpose(out, (0, 3, 1, 2))


# -----------------------------------------------------------------------------
# Main
# -----------------------------------------------------------------------------
if __name__ == "__main__":
    B, Cin, Cout, H, W = 2, 4, 8, 16, 16   # W * Cout = 128 -> full-lane stores

    key = jax.random.PRNGKey(0)
    kx, k1, k2, k3, kb1, kb2, kb3 = jax.random.split(key, 7)

    # Deterministic synthetic parameters (HWIO layout), ~Conv2d init scale.
    w1 = 0.1 * jax.random.normal(k1, (3, 3, Cin, Cout), jnp.float32)
    b1 = 0.05 * jax.random.normal(kb1, (Cout,), jnp.float32)
    w2 = 0.1 * jax.random.normal(k2, (3, 3, Cout, Cout), jnp.float32)
    b2 = 0.05 * jax.random.normal(kb2, (Cout,), jnp.float32)
    w3 = 0.1 * jax.random.normal(k3, (3, 3, Cout, Cout), jnp.float32)
    b3 = 0.05 * jax.random.normal(kb3, (Cout,), jnp.float32)
    params = (w1, b1, w2, b2, w3, b3)

    x = jax.random.normal(kx, (B, Cin, H, W), jnp.float32)   # NCHW like PyTorch

    ref = jax.block_until_ready(attention3_ref(x, params))

    # f32 MXU path (exact softmax divide).
    out = jax.block_until_ready(attention3_forward(x, params))
    assert out.shape == (B, Cout, H, W), out.shape
    np.testing.assert_allclose(np.asarray(out), np.asarray(ref),
                               rtol=1e-2, atol=1e-3)

    # bf16 MXU path (recommended on v5e / v6e / v7x; f32 accumulation).
    out_bf16 = jax.block_until_ready(
        attention3_forward(x, params, use_bf16_mxu=True))
    np.testing.assert_allclose(np.asarray(out_bf16), np.asarray(ref),
                               rtol=5e-2, atol=5e-3)

    print("KERNEL_OK")
</pallas_src>

<mosaic_0001>
module attributes {stable_mosaic.version = 11 : i64} {
  func.func @_attention3_kernel(%arg0: i32, %arg1: memref<1x16x64xf32, #tpu.memory_space<vmem>>, %arg2: memref<3x64x128xf32, #tpu.memory_space<vmem>>, %arg3: memref<1x128xf32, #tpu.memory_space<vmem>>, %arg4: memref<3x128x128xf32, #tpu.memory_space<vmem>>, %arg5: memref<1x128xf32, #tpu.memory_space<vmem>>, %arg6: memref<3x128x128xf32, #tpu.memory_space<vmem>>, %arg7: memref<1x128xf32, #tpu.memory_space<vmem>>, %arg8: memref<1x16x128xf32, #tpu.memory_space<vmem>>) attributes {dimension_semantics = [#tpu.dimension_semantics<parallel>], iteration_bounds = array<i64: 2>, scalar_prefetch = 0 : i64, scratch_operands = 0 : i64, tpu.core_type = #tpu.core_type<tc>, window_params = [{transform_indices = @transform_0, window_bounds = array<i64: 1, 16, 64>}, {pipeline_mode = #tpu.pipeline_mode<synchronous>, transform_indices = @transform_1, window_bounds = array<i64: 3, 64, 128>}, {pipeline_mode = #tpu.pipeline_mode<synchronous>, transform_indices = @transform_2, window_bounds = array<i64: 1, 128>}, {pipeline_mode = #tpu.pipeline_mode<synchronous>, transform_indices = @transform_3, window_bounds = array<i64: 3, 128, 128>}, {pipeline_mode = #tpu.pipeline_mode<synchronous>, transform_indices = @transform_4, window_bounds = array<i64: 1, 128>}, {pipeline_mode = #tpu.pipeline_mode<synchronous>, transform_indices = @transform_5, window_bounds = array<i64: 3, 128, 128>}, {pipeline_mode = #tpu.pipeline_mode<synchronous>, transform_indices = @transform_6, window_bounds = array<i64: 1, 128>}, {transform_indices = @transform_7, window_bounds = array<i64: 1, 16, 128>}]} {
    %0 = tpu.iota {dimensions = array<i32: 0>} : vector<16x1xi32>
    %c16_i32 = arith.constant 16 : i32
    %c0_i32 = arith.constant 0 : i32
    %1 = arith.cmpi eq, %c16_i32, %c0_i32 : i32
    %c1_i32 = arith.constant 1 : i32
    %2 = arith.select %1, %c1_i32, %c16_i32 : i32
    %3 = vector.broadcast %2 : i32 to vector<16x1xi32>
    %4 = arith.remsi %0, %3 : vector<16x1xi32>
    %c0_i32_0 = arith.constant 0 : i32
    %5 = vector.broadcast %c0_i32_0 : i32 to vector<16x1xi32>
    %6 = arith.cmpi ne, %4, %5 : vector<16x1xi32>
    %c0_i32_1 = arith.constant 0 : i32
    %7 = vector.broadcast %c0_i32_1 : i32 to vector<16x1xi32>
    %8 = arith.cmpi slt, %4, %7 : vector<16x1xi32>
    %c0_i32_2 = arith.constant 0 : i32
    %9 = arith.cmpi slt, %2, %c0_i32_2 : i32
    %10 = vector.broadcast %9 : i1 to vector<16x1xi1>
    %11 = vector.broadcast %10 : vector<16x1xi1> to vector<16x1xi1>
    %12 = arith.xori %8, %11 : vector<16x1xi1>
    %13 = arith.andi %12, %6 : vector<16x1xi1>
    %14 = vector.broadcast %2 : i32 to vector<16x1xi32>
    %15 = arith.addi %4, %14 : vector<16x1xi32>
    %16 = arith.select %13, %15, %4 : vector<16x1xi1>, vector<16x1xi32>
    %c0_i32_3 = arith.constant 0 : i32
    %17 = vector.broadcast %c0_i32_3 : i32 to vector<16x1xi32>
    %18 = arith.cmpi ne, %16, %17 : vector<16x1xi32>
    %c15_i32 = arith.constant 15 : i32
    %19 = vector.broadcast %c15_i32 : i32 to vector<16x1xi32>
    %20 = arith.cmpi ne, %16, %19 : vector<16x1xi32>
    %c0 = arith.constant 0 : index
    %c0_4 = arith.constant 0 : index
    %c0_5 = arith.constant 0 : index
    %21 = vector.load %arg1[%c0, %c0_4, %c0_5] : memref<1x16x64xf32, #tpu.memory_space<vmem>>, vector<1x16x64xf32>
    %22 = vector.shape_cast %21 : vector<1x16x64xf32> to vector<16x64xf32>
    %c1_i32_6 = arith.constant 1 : i32
    %23 = tpu.dynamic_rotate %22 by %c1_i32_6 dim 0 : vector<16x64xf32>, i32 -> vector<16x64xf32>
    %cst = arith.constant 0.000000e+00 : f32
    %24 = vector.shape_cast %18 : vector<16x1xi1> to vector<16x1xi1>
    %25 = vector.broadcast %24 : vector<16x1xi1> to vector<16x64xi1>
    %26 = vector.broadcast %cst : f32 to vector<16x64xf32>
    %27 = arith.select %25, %23, %26 : vector<16x64xi1>, vector<16x64xf32>
    %c15_i32_7 = arith.constant 15 : i32
    %28 = tpu.dynamic_rotate %22 by %c15_i32_7 dim 0 : vector<16x64xf32>, i32 -> vector<16x64xf32>
    %cst_8 = arith.constant 0.000000e+00 : f32
    %29 = vector.shape_cast %20 : vector<16x1xi1> to vector<16x1xi1>
    %30 = vector.broadcast %29 : vector<16x1xi1> to vector<16x64xi1>
    %31 = vector.broadcast %cst_8 : f32 to vector<16x64xf32>
    %32 = arith.select %30, %28, %31 : vector<16x64xi1>, vector<16x64xf32>
    %c0_9 = arith.constant 0 : index
    %c0_10 = arith.constant 0 : index
    %c0_11 = arith.constant 0 : index
    %33 = vector.load %arg2[%c0_9, %c0_10, %c0_11] : memref<3x64x128xf32, #tpu.memory_space<vmem>>, vector<1x64x128xf32>
    %34 = vector.shape_cast %33 : vector<1x64x128xf32> to vector<64x128xf32>
    %cst_12 = arith.constant dense<0.000000e+00> : vector<16x128xf32>
    %35 = tpu.matmul %27, %34, %cst_12 {dimension_numbers = #tpu.dot_dimension_numbers<[1], [0], [0], [1], [0, 0, 1, 1], [], []>} : vector<16x64xf32>, vector<64x128xf32>, vector<16x128xf32> -> vector<16x128xf32>
    %c1 = arith.constant 1 : index
    %c0_13 = arith.constant 0 : index
    %c0_14 = arith.constant 0 : index
    %36 = vector.load %arg2[%c1, %c0_13, %c0_14] : memref<3x64x128xf32, #tpu.memory_space<vmem>>, vector<1x64x128xf32>
    %37 = vector.shape_cast %36 : vector<1x64x128xf32> to vector<64x128xf32>
    %cst_15 = arith.constant dense<0.000000e+00> : vector<16x128xf32>
    %38 = tpu.matmul %22, %37, %cst_15 {dimension_numbers = #tpu.dot_dimension_numbers<[1], [0], [0], [1], [0, 0, 1, 1], [], []>} : vector<16x64xf32>, vector<64x128xf32>, vector<16x128xf32> -> vector<16x128xf32>
    %39 = arith.addf %35, %38 : vector<16x128xf32>
    %c2 = arith.constant 2 : index
    %c0_16 = arith.constant 0 : index
    %c0_17 = arith.constant 0 : index
    %40 = vector.load %arg2[%c2, %c0_16, %c0_17] : memref<3x64x128xf32, #tpu.memory_space<vmem>>, vector<1x64x128xf32>
    %41 = vector.shape_cast %40 : vector<1x64x128xf32> to vector<64x128xf32>
    %cst_18 = arith.constant dense<0.000000e+00> : vector<16x128xf32>
    %42 = tpu.matmul %32, %41, %cst_18 {dimension_numbers = #tpu.dot_dimension_numbers<[1], [0], [0], [1], [0, 0, 1, 1], [], []>} : vector<16x64xf32>, vector<64x128xf32>, vector<16x128xf32> -> vector<16x128xf32>
    %43 = arith.addf %39, %42 : vector<16x128xf32>
    %c0_19 = arith.constant 0 : index
    %c0_20 = arith.constant 0 : index
    %44 = vector.load %arg3[%c0_19, %c0_20] : memref<1x128xf32, #tpu.memory_space<vmem>>, vector<1x128xf32>
    %45 = vector.broadcast %44 : vector<1x128xf32> to vector<16x128xf32>
    %46 = arith.addf %43, %45 : vector<16x128xf32>
    %cst_21 = arith.constant 0.000000e+00 : f32
    %47 = vector.broadcast %cst_21 : f32 to vector<16x128xf32>
    %48 = arith.maximumf %46, %47 : vector<16x128xf32>
    %c1_i32_22 = arith.constant 1 : i32
    %49 = tpu.dynamic_rotate %48 by %c1_i32_22 dim 0 : vector<16x128xf32>, i32 -> vector<16x128xf32>
    %cst_23 = arith.constant 0.000000e+00 : f32
    %50 = vector.shape_cast %18 : vector<16x1xi1> to vector<16x1xi1>
    %51 = vector.broadcast %50 : vector<16x1xi1> to vector<16x128xi1>
    %52 = vector.broadcast %cst_23 : f32 to vector<16x128xf32>
    %53 = arith.select %51, %49, %52 : vector<16x128xi1>, vector<16x128xf32>
    %c15_i32_24 = arith.constant 15 : i32
    %54 = tpu.dynamic_rotate %48 by %c15_i32_24 dim 0 : vector<16x128xf32>, i32 -> vector<16x128xf32>
    %cst_25 = arith.constant 0.000000e+00 : f32
    %55 = vector.shape_cast %20 : vector<16x1xi1> to vector<16x1xi1>
    %56 = vector.broadcast %55 : vector<16x1xi1> to vector<16x128xi1>
    %57 = vector.broadcast %cst_25 : f32 to vector<16x128xf32>
    %58 = arith.select %56, %54, %57 : vector<16x128xi1>, vector<16x128xf32>
    %c0_26 = arith.constant 0 : index
    %c0_27 = arith.constant 0 : index
    %c0_28 = arith.constant 0 : index
    %59 = vector.load %arg4[%c0_26, %c0_27, %c0_28] : memref<3x128x128xf32, #tpu.memory_space<vmem>>, vector<1x128x128xf32>
    %60 = vector.shape_cast %59 : vector<1x128x128xf32> to vector<128x128xf32>
    %cst_29 = arith.constant dense<0.000000e+00> : vector<16x128xf32>
    %61 = tpu.matmul %53, %60, %cst_29 {dimension_numbers = #tpu.dot_dimension_numbers<[1], [0], [0], [1], [0, 0, 1, 1], [], []>} : vector<16x128xf32>, vector<128x128xf32>, vector<16x128xf32> -> vector<16x128xf32>
    %c1_30 = arith.constant 1 : index
    %c0_31 = arith.constant 0 : index
    %c0_32 = arith.constant 0 : index
    %62 = vector.load %arg4[%c1_30, %c0_31, %c0_32] : memref<3x128x128xf32, #tpu.memory_space<vmem>>, vector<1x128x128xf32>
    %63 = vector.shape_cast %62 : vector<1x128x128xf32> to vector<128x128xf32>
    %cst_33 = arith.constant dense<0.000000e+00> : vector<16x128xf32>
    %64 = tpu.matmul %48, %63, %cst_33 {dimension_numbers = #tpu.dot_dimension_numbers<[1], [0], [0], [1], [0, 0, 1, 1], [], []>} : vector<16x128xf32>, vector<128x128xf32>, vector<16x128xf32> -> vector<16x128xf32>
    %65 = arith.addf %61, %64 : vector<16x128xf32>
    %c2_34 = arith.constant 2 : index
    %c0_35 = arith.constant 0 : index
    %c0_36 = arith.constant 0 : index
    %66 = vector.load %arg4[%c2_34, %c0_35, %c0_36] : memref<3x128x128xf32, #tpu.memory_space<vmem>>, vector<1x128x128xf32>
    %67 = vector.shape_cast %66 : vector<1x128x128xf32> to vector<128x128xf32>
    %cst_37 = arith.constant dense<0.000000e+00> : vector<16x128xf32>
    %68 = tpu.matmul %58, %67, %cst_37 {dimension_numbers = #tpu.dot_dimension_numbers<[1], [0], [0], [1], [0, 0, 1, 1], [], []>} : vector<16x128xf32>, vector<128x128xf32>, vector<16x128xf32> -> vector<16x128xf32>
    %69 = arith.addf %65, %68 : vector<16x128xf32>
    %c0_38 = arith.constant 0 : index
    %c0_39 = arith.constant 0 : index
    %70 = vector.load %arg5[%c0_38, %c0_39] : memref<1x128xf32, #tpu.memory_space<vmem>>, vector<1x128xf32>
    %71 = vector.broadcast %70 : vector<1x128xf32> to vector<16x128xf32>
    %72 = arith.addf %69, %71 : vector<16x128xf32>
    %cst_40 = arith.constant 0.000000e+00 : f32
    %73 = vector.broadcast %cst_40 : f32 to vector<16x128xf32>
    %74 = arith.maximumf %72, %73 : vector<16x128xf32>
    %c1_i32_41 = arith.constant 1 : i32
    %75 = tpu.dynamic_rotate %74 by %c1_i32_41 dim 0 : vector<16x128xf32>, i32 -> vector<16x128xf32>
    %cst_42 = arith.constant 0.000000e+00 : f32
    %76 = vector.shape_cast %18 : vector<16x1xi1> to vector<16x1xi1>
    %77 = vector.broadcast %76 : vector<16x1xi1> to vector<16x128xi1>
    %78 = vector.broadcast %cst_42 : f32 to vector<16x128xf32>
    %79 = arith.select %77, %75, %78 : vector<16x128xi1>, vector<16x128xf32>
    %c15_i32_43 = arith.constant 15 : i32
    %80 = tpu.dynamic_rotate %74 by %c15_i32_43 dim 0 : vector<16x128xf32>, i32 -> vector<16x128xf32>
    %cst_44 = arith.constant 0.000000e+00 : f32
    %81 = vector.shape_cast %20 : vector<16x1xi1> to vector<16x1xi1>
    %82 = vector.broadcast %81 : vector<16x1xi1> to vector<16x128xi1>
    %83 = vector.broadcast %cst_44 : f32 to vector<16x128xf32>
    %84 = arith.select %82, %80, %83 : vector<16x128xi1>, vector<16x128xf32>
    %c0_45 = arith.constant 0 : index
    %c0_46 = arith.constant 0 : index
    %c0_47 = arith.constant 0 : index
    %85 = vector.load %arg6[%c0_45, %c0_46, %c0_47] : memref<3x128x128xf32, #tpu.memory_space<vmem>>, vector<1x128x128xf32>
    %86 = vector.shape_cast %85 : vector<1x128x128xf32> to vector<128x128xf32>
    %cst_48 = arith.constant dense<0.000000e+00> : vector<16x128xf32>
    %87 = tpu.matmul %79, %86, %cst_48 {dimension_numbers = #tpu.dot_dimension_numbers<[1], [0], [0], [1], [0, 0, 1, 1], [], []>} : vector<16x128xf32>, vector<128x128xf32>, vector<16x128xf32> -> vector<16x128xf32>
    %c1_49 = arith.constant 1 : index
    %c0_50 = arith.constant 0 : index
    %c0_51 = arith.constant 0 : index
    %88 = vector.load %arg6[%c1_49, %c0_50, %c0_51] : memref<3x128x128xf32, #tpu.memory_space<vmem>>, vector<1x128x128xf32>
    %89 = vector.shape_cast %88 : vector<1x128x128xf32> to vector<128x128xf32>
    %cst_52 = arith.constant dense<0.000000e+00> : vector<16x128xf32>
    %90 = tpu.matmul %74, %89, %cst_52 {dimension_numbers = #tpu.dot_dimension_numbers<[1], [0], [0], [1], [0, 0, 1, 1], [], []>} : vector<16x128xf32>, vector<128x128xf32>, vector<16x128xf32> -> vector<16x128xf32>
    %91 = arith.addf %87, %90 : vector<16x128xf32>
    %c2_53 = arith.constant 2 : index
    %c0_54 = arith.constant 0 : index
    %c0_55 = arith.constant 0 : index
    %92 = vector.load %arg6[%c2_53, %c0_54, %c0_55] : memref<3x128x128xf32, #tpu.memory_space<vmem>>, vector<1x128x128xf32>
    %93 = vector.shape_cast %92 : vector<1x128x128xf32> to vector<128x128xf32>
    %cst_56 = arith.constant dense<0.000000e+00> : vector<16x128xf32>
    %94 = tpu.matmul %84, %93, %cst_56 {dimension_numbers = #tpu.dot_dimension_numbers<[1], [0], [0], [1], [0, 0, 1, 1], [], []>} : vector<16x128xf32>, vector<128x128xf32>, vector<16x128xf32> -> vector<16x128xf32>
    %95 = arith.addf %91, %94 : vector<16x128xf32>
    %c0_57 = arith.constant 0 : index
    %c0_58 = arith.constant 0 : index
    %96 = vector.load %arg7[%c0_57, %c0_58] : memref<1x128xf32, #tpu.memory_space<vmem>>, vector<1x128xf32>
    %97 = vector.broadcast %96 : vector<1x128xf32> to vector<16x128xf32>
    %98 = arith.addf %95, %97 : vector<16x128xf32>
    %c8_i32 = arith.constant 8 : i32
    %99 = tpu.dynamic_rotate %98 by %c8_i32 dim 1 : vector<16x128xf32>, i32 -> vector<16x128xf32>
    %100 = arith.maximumf %98, %99 : vector<16x128xf32>
    %c16_i32_59 = arith.constant 16 : i32
    %101 = tpu.dynamic_rotate %100 by %c16_i32_59 dim 1 : vector<16x128xf32>, i32 -> vector<16x128xf32>
    %102 = arith.maximumf %100, %101 : vector<16x128xf32>
    %c32_i32 = arith.constant 32 : i32
    %103 = tpu.dynamic_rotate %102 by %c32_i32 dim 1 : vector<16x128xf32>, i32 -> vector<16x128xf32>
    %104 = arith.maximumf %102, %103 : vector<16x128xf32>
    %c64_i32 = arith.constant 64 : i32
    %105 = tpu.dynamic_rotate %104 by %c64_i32 dim 1 : vector<16x128xf32>, i32 -> vector<16x128xf32>
    %106 = arith.maximumf %104, %105 : vector<16x128xf32>
    %107 = arith.subf %98, %106 : vector<16x128xf32>
    %108 = math.exp %107 : vector<16x128xf32>
    %c8_i32_60 = arith.constant 8 : i32
    %109 = tpu.dynamic_rotate %108 by %c8_i32_60 dim 1 : vector<16x128xf32>, i32 -> vector<16x128xf32>
    %110 = arith.addf %108, %109 : vector<16x128xf32>
    %c16_i32_61 = arith.constant 16 : i32
    %111 = tpu.dynamic_rotate %110 by %c16_i32_61 dim 1 : vector<16x128xf32>, i32 -> vector<16x128xf32>
    %112 = arith.addf %110, %111 : vector<16x128xf32>
    %c32_i32_62 = arith.constant 32 : i32
    %113 = tpu.dynamic_rotate %112 by %c32_i32_62 dim 1 : vector<16x128xf32>, i32 -> vector<16x128xf32>
    %114 = arith.addf %112, %113 : vector<16x128xf32>
    %c64_i32_63 = arith.constant 64 : i32
    %115 = tpu.dynamic_rotate %114 by %c64_i32_63 dim 1 : vector<16x128xf32>, i32 -> vector<16x128xf32>
    %116 = arith.addf %114, %115 : vector<16x128xf32>
    %117 = arith.divf %108, %116 : vector<16x128xf32>
    %118 = arith.mulf %117, %48 : vector<16x128xf32>
    %119 = vector.shape_cast %118 : vector<16x128xf32> to vector<1x16x128xf32>
    %c0_64 = arith.constant 0 : index
    %c0_65 = arith.constant 0 : index
    %c0_66 = arith.constant 0 : index
    %120 = vector.load %arg8[%c0_64, %c0_65, %c0_66] : memref<1x16x128xf32, #tpu.memory_space<vmem>>, vector<1x16x128xf32>
    tpu.vector_store %arg8[%c0_64, %c0_65, %c0_66], %119 {strides = array<i32>} : memref<1x16x128xf32, #tpu.memory_space<vmem>>, vector<1x16x128xf32>,
    return
  }
  func.func @transform_0(%arg0: i32) -> (i32, i32, i32) {
    %c0_i32 = arith.constant 0 : i32
    %c0_i32_0 = arith.constant 0 : i32
    %c0_i32_1 = arith.constant 0 : i32
    return %arg0, %c0_i32, %c0_i32_0 : i32, i32, i32
  }
  func.func @transform_1(%arg0: i32) -> (i32, i32, i32) {
    %c0_i32 = arith.constant 0 : i32
    %c0_i32_0 = arith.constant 0 : i32
    %c0_i32_1 = arith.constant 0 : i32
    %c0_i32_2 = arith.constant 0 : i32
    return %c0_i32, %c0_i32_0, %c0_i32_1 : i32, i32, i32
  }
  func.func @transform_2(%arg0: i32) -> (i32, i32) {
    %c0_i32 = arith.constant 0 : i32
    %c0_i32_0 = arith.constant 0 : i32
    %c0_i32_1 = arith.constant 0 : i32
    return %c0_i32, %c0_i32_0 : i32, i32
  }
  func.func @transform_3(%arg0: i32) -> (i32, i32, i32) {
    %c0_i32 = arith.constant 0 : i32
    %c0_i32_0 = arith.constant 0 : i32
    %c0_i32_1 = arith.constant 0 : i32
    %c0_i32_2 = arith.constant 0 : i32
    return %c0_i32, %c0_i32_0, %c0_i32_1 : i32, i32, i32
  }
  func.func @transform_4(%arg0: i32) -> (i32, i32) {
    %c0_i32 = arith.constant 0 : i32
    %c0_i32_0 = arith.constant 0 : i32
    %c0_i32_1 = arith.constant 0 : i32
    return %c0_i32, %c0_i32_0 : i32, i32
  }
  func.func @transform_5(%arg0: i32) -> (i32, i32, i32) {
    %c0_i32 = arith.constant 0 : i32
    %c0_i32_0 = arith.constant 0 : i32
    %c0_i32_1 = arith.constant 0 : i32
    %c0_i32_2 = arith.constant 0 : i32
    return %c0_i32, %c0_i32_0, %c0_i32_1 : i32, i32, i32
  }
  func.func @transform_6(%arg0: i32) -> (i32, i32) {
    %c0_i32 = arith.constant 0 : i32
    %c0_i32_0 = arith.constant 0 : i32
    %c0_i32_1 = arith.constant 0 : i32
    return %c0_i32, %c0_i32_0 : i32, i32
  }
  func.func @transform_7(%arg0: i32) -> (i32, i32, i32) {
    %c0_i32 = arith.constant 0 : i32
    %c0_i32_0 = arith.constant 0 : i32
    %c0_i32_1 = arith.constant 0 : i32
    return %arg0, %c0_i32, %c0_i32_0 : i32, i32, i32
  }
}

</mosaic_0001>

<bundles_post_ra>
// kernel: tpu_custom_call.1
= control target key start
LH: loop header
LB: loop body
LE: loop exit
PB: predicated region body
PF: predicated region fallthrough
CT: control target
= control target key end

     0   :  { %s1659_s0 = inlined_call_operand.hbm [shape: f32[2,16,64], index: 0, kind: input, shape index: {}]   ;;  %s1660_s1 = inlined_call_operand.hbm [shape: f32[3,64,128], index: 1, kind: input, shape index: {}]   ;;  %s1661_s2 = inlined_call_operand.vmem [shape: f32[1,128], index: 2, kind: input, shape index: {}]   ;;  %s1662_s3 = inlined_call_operand.hbm [shape: f32[3,128,128], index: 3, kind: input, shape index: {}]   ;;  %s1663_s4 = inlined_call_operand.vmem [shape: f32[1,128], index: 4, kind: input, shape index: {}]   ;;  %s1664_s5 = inlined_call_operand.hbm [shape: f32[3,128,128], index: 5, kind: input, shape index: {}]   ;;  %s1665_s6 = inlined_call_operand.vmem [shape: f32[1,128], index: 6, kind: input, shape index: {}]   ;;  %s1666_s7 = inlined_call_operand.hbm [shape: f32[2,16,128], index: 7, kind: output, shape index: {}]  }
   0x1   :  { %1669 = sst [smem:[#allocation15_spill]] %s1660_s1 }
   0x2   :  { %12 = vsyncpa [#allocation3], 0 }
   0x3   :  { %14 = vsyncpa [#allocation3 + $0x1], 0 }
   0x4   :  { %15 = vsyncpa [#allocation6], 0 }
   0x5   :  { %16 = vsyncpa [#allocation9], 0 }
   0x6   :  { %17 = vsyncpa [#allocation4], 0 }
   0x7   :  { %19 = vsyncpa [#allocation4 + $0x1], 0  ;;  %s1387_s24 = smov 0   ;;  %s1389_s25 = smov 0  }
   0x8   :  { %s1391_s26 = smov 0   ;;  %s1393_s27 = smov 0  }
   0x9 LB: > { %s1408_s28 = sadd.s32 4294967295, %s1335_s27   ;;  %s1014_s29 = sadd.s32 4294967294, %s1335_s27   ;;  %s1335_s27 = sphi %s1393_s27, %s1687_s27   ;;  %s1331_s26 = sphi %s1391_s26, %s1686_s26   ;;  %s1327_s25 = sphi %s1389_s25, %s1685_s25   ;;  %s1323_s24 = sphi %s1387_s24, %s1684_s24  }
   0xa   : > { %p45_p0 = scmp.ne.s32.totalorder %s1327_s25, %s1323_s24  ;;  %p46_p1 = scmp.eq.s32.totalorder %s1408_s28, 0 }
   0xb   : > { %p195_p2 = scmp.eq.s32.totalorder %s1408_s28, 1  ;;  %p201_p3 = scmp.eq.s32.totalorder %s1014_s29, 1 }
   0xc   : > { %p1417_p4 = por %p46_p1, %p45_p0  ;;  %p1015_p5 = scmp.ge.s32.totalorder %s1335_s27, 1 }
   0xd   : > { %p1422_p6 = por %p201_p3, %p45_p0  ;;  %p208_p7 = scmp.lt.s32.totalorder %s1335_s27, 3 }
   0xe   : > { %s1672_s1 = sld [smem:[#allocation15_spill]]  ;;  %s1337_s13 = smov [#allocation5]  }
   0xf   : > { %p1430_p8 = pnand %p1015_p5, %p208_p7  ;;  %s221_s14 = sshll.u32 %s1337_s13, 4  ;;  %s222_s14 = int_to_ptr.vmem [resolvable:$true] %s221_s14 }
  0x10   : > { %s236_s18 = sshll.u32 %s1662_s3, 4  ;;  %s1667_s19 = smov 128   ;;  %s237_s18 = int_to_ptr.hbm [resolvable:$true] %s236_s18 }
  0x11   : > { %p1062_p9 = pneg %p1430_p8  ;;  %s1668_s20 = smov 8  }
  0x12   : > { %s1340_s21 = smov [#allocation7]   ;;  %s253_s9 = sshll.u32 %s1664_s5, 4  ;;  %s254_s9 = int_to_ptr.hbm [resolvable:$true] %s253_s9 }
  0x13   : > { %p1438_p10 = pnand %p1062_p9, %p46_p1  ;;  %s238_s22 = sshll.u32 %s1340_s21, 4  ;;  %s239_s22 = int_to_ptr.vmem [resolvable:$true] %s238_s22 }
  0x14   : > { %s219_s11 = sshll.u32 %s1672_s1, 4  ;;  %s1341_s10 = smov [#allocation8]   ;;  %s220_s11 = int_to_ptr.hbm [resolvable:$true] %s219_s11 }
  0x15   : > { %1065 = dma.hbm_to_vmem [thread:$0]  (!%p1438_p10), %s220_s11, 3072, %s222_s14, [#allocation6], %s1667_s19, %s1667_s19, %s1668_s20  }
  0x16   : > { %1068 = dma.hbm_to_vmem [thread:$0]  (!%p1438_p10), %s237_s18, 6144, %s239_s22, [#allocation6], %s1667_s19, %s1667_s19, %s1668_s20  }
  0x17   : > { %s255_s11 = sshll.u32 %s1341_s10, 4  ;;  %s1460_s13 = sadd.s32 1, %s1335_s27   ;;  %s256_s11 = int_to_ptr.vmem [resolvable:$true] %s255_s11 }
  0x18   : > { %1071 = dma.hbm_to_vmem [thread:$0]  (!%p1438_p10), %s254_s9, 6144, %s256_s11, [#allocation9], %s1667_s19, %s1667_s19, %s1668_s20  }
  0x19   : > { %s29_s14 = ssub.s32 %s1335_s27, %s1460_s13  ;;  %s32_s16 = sadd.s32 1, %s1331_s26 }
  0x1a   : > { %p30_p12 = scmp.eq.s32.totalorder %s29_s14, 0  ;;  %p39_p13 = scmp.ne.s32.totalorder %s1331_s26, %s1327_s25 }
  0x1b   : > { %p40_p0 = scmp.eq.s32.totalorder %s1335_s27, 0  ;;  %p1083_p5 = scmp.lt.s32.totalorder %s1335_s27, 2 }
  0x1c   : > { %s1474_s17 = scalar_select %p30_p12, %s1331_s26, %s32_s16  }
  0x1d   : > { %p1478_p3 = por %p195_p2, %p39_p13  ;;  %s272_s21 = sand.u32 1, %s1331_s26  }
  0x1e   : > { %s1044_s15 = sshll.u32 %s1335_s27, 4  ;;  %p41_p7 = por %p40_p0, %p39_p13 }
  0x1f   : > { %s1020_s22 = sshll.u32 %s272_s21, 4  ;;  %s281_s9 = scalar_lea.hbm %s1659_s0, %s1044_s15 }
  0x20   : > { %s282_s10 = sshll.u32 %s281_s9, 4  ;;  %s276_s11 = scalar_lea.vmem [#allocation2], %s1020_s22  ;;  %s283_s10 = int_to_ptr.hbm [resolvable:$true] %s282_s10 }
  0x21   : > { %s284_s14 = sshll.u32 %s276_s11, 4  ;;  %p1488_p9 = pnand %p1083_p5, %p41_p7  ;;  %s285_s14 = int_to_ptr.vmem [resolvable:$true] %s284_s14 }
  0x22   : > { %s273_s19 = scalar_lea.sflag [#allocation3], %s272_s21  ;;  %s1231_s20 = sshra.s32 %s283_s10, 4  ;;  %s1232_s20 = int_to_ptr.hbm [resolvable:$true] %s1231_s20 }
  0x23   : > { %s1233_s1 = scalar_lea.hbm %s1232_s20, 16  ;;  %p1235_p10 = pneg %p1488_p9 }
  0x24   : > { %p1234_p2 = scmp.ne.s32.totalorder %s1232_s20, %s1233_s1  ;;  %s1238_s22 = scalar_lea.hbm %s1659_s0, 32 }
  0x25   : > { %p1239_p0 = scmp.lt.s32.totalorder %s1232_s20, %s1659_s0  ;;  %p1240_p5 = scmp.lt.s32.totalorder %s1238_s22, %s1233_s1 }
  0x26   : > { %p1236_p12 = pnand %p1235_p10, %p1234_p2 }
  0x27   : > { %p1241_p7 = por %p1240_p5, %p1239_p0 }
  0x28   : > { %p1237_p13 = pneg %p1236_p12 }
  0x2a   : > { %p1242_p11 = pnand %p1241_p7, %p1237_p13 }
  0x2c   : > { %1245 = shalt.err (!%p1242_p11)
}
  0x2d   : > { %s1677_s21 = smov 8   ;;  %s1678_s11 = smov 128  }
  0x2e   : > { %1075 = dma.hbm_to_vmem [thread:$0]  (!%p1488_p9), %s283_s10, 256, %s285_s14, %s273_s19, %s1678_s11, %s1678_s11, %s1677_s21  }
  0x2f   : > { %296 = sbr.rel (%p1430_p8) target bundleno = 1449 (0x5a9), region = 48  ;;  %s1508_s15 = sand.u32 (!%p1430_p8), 1, %s1327_s25  }
  0x30   : > { %s1024_s1 = sshll.u32 (!%p1430_p8), %s1508_s15, 4  ;;  %s299_s20 = scalar_lea.sflag (!%p1430_p8), [#allocation3], %s1508_s15 }
  0x31   : > { %s1514_s23 = scalar_lea.vmem (!%p1430_p8), [#allocation2], %s1024_s1 }
  0x34   : > { %1306 = dma.done.wait (%p1417_p4), %s299_s20, 256  }
  0x35   : > { %1308 = vsyncadd (%p1417_p4), %s299_s20, 4294967040 }
  0x36   : > { %1310 = dma.done.wait (%p46_p1), [#allocation6], 9216  }
  0x37   : > { %1312 = vsyncadd (%p46_p1), [#allocation6], 4294958080 }
  0x38   : > { %1314 = dma.done.wait (%p46_p1), [#allocation9], 6144  }
  0x39   : > { %1316 = vsyncadd (%p46_p1), [#allocation9], 4294961152  ;;  %v420_v0 = vld [vmem:[#allocation5 + $0x78] sm:$0xff]  ;;  %v419_v1 = vld [vmem:[#allocation5 + $0x70] sm:$0xff]  ;;  %v349_v7 = vlaneseq  ;;  %vm421_vm1 = vcmask 523264   ;;  %s1342_s22 = smov 8  }
  0x3a   : > { %436 = vmatpush.msra.mxu1 %v420_v0  ;;  %v418_v2 = vld [vmem:[#allocation5 + $0x68] sm:$0xff]  ;;  %v488_v3 = vld [vmem:[#allocation5 + $0xb8] sm:$0xff]  ;;  %v487_v4 = vld [vmem:[#allocation5 + $0xb0] sm:$0xff]  ;;  %s1343_s29 = smov 16   ;;  %s1344_s9 = smov 32  }
  0x3b   : > { %503 = vmatpush.msra.mxu2 %v488_v3  ;;  %v417_v5 = vld [vmem:[#allocation5 + $0x60] sm:$0xff]  ;;  %v486_v6 = vld [vmem:[#allocation5 + $0xa8] sm:$0xff]  ;;  %v416_v8 = vld [vmem:[#allocation5 + $0x58] sm:$0xff]  ;;  %v1529_v14 = vshrl.u32 %v349_v7, 7  ;;  %s1345_s21 = smov 64   ;;  %s348_s11 = scalar_lea.vmem [#allocation10], %s1024_s1 }
  0x3c   : > { %437 = vmatpush.msra.mxu1 %v419_v1  ;;  %v485_v9 = vld [vmem:[#allocation5 + $0xa0] sm:$0xff]  ;;  %v415_v10 = vld [vmem:[#allocation5 + $0x50] sm:$0xff]  ;;  %v414_v11 = vld [vmem:[#allocation5 + $0x48] sm:$0xff]  ;;  %s1045_s20 = sshll.u32 %s1408_s28, 4  ;;  %s909_s1 = sshll.u32 %s348_s11, 4  ;;  %s910_s1 = int_to_ptr.vmem [resolvable:$true] %s909_s1 }
  0x3d   : > { %504 = vmatpush.msra.mxu2 %v487_v4  ;;  %v484_v12 = vld [vmem:[#allocation5 + $0x98] sm:$0xff]  ;;  %v380_v16 = vld [vmem:[%s1514_s23] sm:$0xff]  ;;  %v570_v21 = vld [vmem:[#allocation7 + $0xe8] sm:$0xff]  ;;  %vm395_vm0 = vcmp.lt.s32.totalorder %v1529_v14, 7  ;;  %v351_v24 = vadd.s32 8, %v1529_v14  ;;  %v356_v37 = vand.u32 15, %v1529_v14  ;;  %s908_s12 = scalar_lea.hbm %s1666_s7, %s1045_s20 }
  0x3e   : > { %438 = vmatpush.msra.mxu1 %v418_v2  ;;  %v381_v13 = vld [vmem:[%s1514_s23 + $0x8] sm:$0xff]  ;;  %v571_v17 = vld [vmem:[#allocation7 + $0xf0] sm:$0xff]  ;;  %v393_v19 = vrot.slane %v380_v16, 1  ;;  %v413_v22 = vld [vmem:[#allocation5 + $0x40] sm:$0xff]  ;;  %v382_v34 = vrot.slane %v380_v16, 7  ;;  %vm384_vm3 = vcmp.lt.s32.totalorder %v1529_v14, 1 }
  0x3f   : > { %505 = vmatpush.msra.mxu2 %v486_v6  ;;  %v572_v15 = vld [vmem:[#allocation7 + $0xf8] sm:$0xff]  ;;  %v483_v18 = vld [vmem:[#allocation5 + $0x90] sm:$0xff]  ;;  %v394_v20 = vrot.slane %v381_v13, 1  ;;  %v482_v23 = vld [vmem:[#allocation5 + $0x88] sm:$0xff]  ;;  %v363_v29 = vand.u32 15, %v351_v24  ;;  %v383_v35 = vrot.slane %v381_v13, 7 }
  0x40   : > { %439 = vmatpush.msra.mxu1 %v417_v5  ;;  %573 = vmatpush.msra.mxu3 %v572_v15  ;;  %v411_v25 = vld [vmem:[#allocation5 + $0x38] sm:$0xff]  ;;  %v481_v26 = vld [vmem:[#allocation5 + $0x80] sm:$0xff]  ;;  %v410_v28 = vld [vmem:[#allocation5 + $0x30] sm:$0xff]  ;;  %vm1549_vm4 = vcmp.ne.s32.totalorder %v356_v37, 0  ;;  %s911_s19 = sshll.u32 %s908_s12, 4  ;;  %s897_s28 = scalar_lea.sflag [#allocation4], %s1508_s15  ;;  %s912_s19 = int_to_ptr.hbm [resolvable:$true] %s911_s19 }
  0x41   : > { %506 = vmatpush.msra.mxu2 %v485_v9  ;;  %v396_v27 = vsel %vm395_vm0, %v393_v19, %v394_v20  ;;  %v409_v30 = vld [vmem:[#allocation5 + $0x28] sm:$0xff]  ;;  %v408_v31 = vld [vmem:[#allocation5 + $0x20] sm:$0xff]  ;;  %vm1538_vm2 = vcmp.ne.s32.totalorder %v363_v29, 15  ;;  %v397_v33 = vsel %vm395_vm0, %v394_v20, %v393_v19  ;;  %v407_v36 = vld [vmem:[#allocation5 + $0x18] sm:$0xff]  ;;  %v386_v42 = vsel %vm384_vm3, %v383_v35, %v382_v34  ;;  %s1275_s10 = sshra.s32 %s912_s19, 4  ;;  %s1276_s10 = int_to_ptr.hbm [resolvable:$true] %s1275_s10 }
  0x42   : > { %440 = vmatpush.msra.mxu1 %v416_v8  ;;  %574 = vmatpush.msra.mxu3 %v571_v17  ;;  %v403_v38 = vsel %vm1538_vm2, %v397_v33, 0.0  ;;  %v406_v39 = vld [vmem:[#allocation5 + $0x10] sm:$0xff]  ;;  %v405_v40 = vld [vmem:[#allocation5 + $0x8] sm:$0xff]  ;;  %v404_v43 = vld [vmem:[#allocation5] sm:$0xff]  ;;  %v391_v44 = vsel %vm1549_vm4, %v386_v42, 0.0  ;;  %v385_v45 = vsel %vm384_vm3, %v382_v34, %v383_v35  ;;  %s1277_s14 = scalar_lea.hbm %s1276_s10, 16  ;;  %p1282_p11 = scmp.lt.s32.totalorder %s1276_s10, %s1666_s7 }
  0x43   : > { %507 = vmatpush.msra.mxu2 %v484_v12  ;;  %v569_v46 = vld [vmem:[#allocation7 + $0xe0] sm:$0xff]  ;;  %v568_v47 = vld [vmem:[#allocation7 + $0xd8] sm:$0xff]  ;;  %v567_v49 = vld [vmem:[#allocation7 + $0xd0] sm:$0xff]  ;;  %p1278_p1 = scmp.ne.s32.totalorder %s1276_s10, %s1277_s14 }
  0x44   : > { %441 = vmatpush.msra.mxu1 %v415_v10  ;;  %575 = vmatpush.msra.mxu3 %v570_v21  ;;  %v555_v48 = vld [vmem:[#allocation7 + $0x78] sm:$0xff]  ;;  %v554_v51 = vld [vmem:[#allocation7 + $0x70] sm:$0xff]  ;;  %v566_v53 = vld [vmem:[#allocation7 + $0xc8] sm:$0xff] }
  0x45   : > { %508 = vmatpush.msra.mxu2 %v483_v18  ;;  %596 = vmatpush.msra.mxu0 %v555_v48  ;;  %v635_v50 = vld [vmem:[#allocation7 + $0x178] sm:$0xff]  ;;  %v634_v52 = vld [vmem:[#allocation7 + $0x170] sm:$0xff]  ;;  %v565_v54 = vld [vmem:[#allocation7 + $0xc0] sm:$0xff]  ;;  %p1279_p4 = pnand %p1278_p1, %p1478_p3 }
  0x46   : > { %442 = vmatpush.msra.mxu1 %v414_v11  ;;  %576 = vmatpush.msra.mxu3 %v569_v46  ;;  %v553_v55 = vld [vmem:[#allocation7 + $0x68] sm:$0xff]  ;;  %v564_v57 = vld [vmem:[#allocation7 + $0xb8] sm:$0xff]  ;;  %v552_v58 = vld [vmem:[#allocation7 + $0x60] sm:$0xff] }
  0x47   : > { %509 = vmatpush.msra.mxu2 %v482_v23  ;;  %597 = vmatpush.msra.mxu0 %v554_v51  ;;  %v633_v56 = vld [vmem:[#allocation7 + $0x168] sm:$0xff]  ;;  %v632_v59 = vld [vmem:[#allocation7 + $0x160] sm:$0xff]  ;;  %v563_v60 = vld [vmem:[#allocation7 + $0xb0] sm:$0xff]  ;;  %p1280_p8 = pneg %p1279_p4 }
  0x48   : > { %443 = vmatpush.msra.mxu1 %v413_v22  ;;  %577 = vmatpush.msra.mxu3 %v568_v47  ;;  %v551_v61 = vld [vmem:[#allocation7 + $0x58] sm:$0xff]  ;;  %v562_v63 = vld [vmem:[#allocation7 + $0xa8] sm:$0xff]  ;;  %v550_v0 = vld [vmem:[#allocation7 + $0x50] sm:$0xff] }
  0x49   : > { %1029 = vmatmul.msk.f32.vlgmr.msra.gmra.mxu1 %vm421_vm1, %v380_v16  ;;  %510 = vmatpush.msra.mxu2 %v481_v26  ;;  %v631_v62 = vld [vmem:[#allocation7 + $0x158] sm:$0xff]  ;;  %v630_v1 = vld [vmem:[#allocation7 + $0x150] sm:$0xff]  ;;  %v561_v2 = vld [vmem:[#allocation7 + $0xa0] sm:$0xff] }
  0x4a   : > { %465 = vmatpush.msrb.mxu1 %v411_v25  ;;  %1033 = vmatmul.msk.f32.vlgmr.msra.gmra.mxu2 %vm421_vm1, %v396_v27  ;;  %v549_v3 = vld [vmem:[#allocation7 + $0x48] sm:$0xff]  ;;  %v560_v5 = vld [vmem:[#allocation7 + $0x98] sm:$0xff]  ;;  %v548_v6 = vld [vmem:[#allocation7 + $0x40] sm:$0xff] }
  0x4b   : > { %578 = vmatpush.msra.mxu3 %v567_v49  ;;  %598 = vmatpush.msra.mxu0 %v553_v55  ;;  %v629_v4 = vld [vmem:[#allocation7 + $0x148] sm:$0xff]  ;;  %v628_v7 = vld [vmem:[#allocation7 + $0x140] sm:$0xff]  ;;  %v559_v8 = vld [vmem:[#allocation7 + $0x90] sm:$0xff] }
  0x4c   : > { %466 = vmatpush.msrb.mxu1 %v410_v28  ;;  %v547_v9 = vld [vmem:[#allocation7 + $0x38] sm:$0xff]  ;;  %v558_v11 = vld [vmem:[#allocation7 + $0x88] sm:$0xff]  ;;  %v546_v12 = vld [vmem:[#allocation7 + $0x30] sm:$0xff] }
  0x4d   : > { %579 = vmatpush.msra.mxu3 %v566_v53  ;;  %599 = vmatpush.msra.mxu0 %v552_v58  ;;  %v627_v10 = vld [vmem:[#allocation7 + $0x138] sm:$0xff]  ;;  %v557_v15 = vld [vmem:[#allocation7 + $0x80] sm:$0xff]  ;;  %v545_v16 = vld [vmem:[#allocation7 + $0x28] sm:$0xff] }
  0x4e   : > { %467 = vmatpush.msrb.mxu1 %v409_v30  ;;  %v625_v17 = vld [vmem:[#allocation7 + $0x128] sm:$0xff]  ;;  %v544_v18 = vld [vmem:[#allocation7 + $0x20] sm:$0xff]  ;;  %v543_v20 = vld [vmem:[#allocation7 + $0x18] sm:$0xff] }
  0x4f   : > { %580 = vmatpush.msra.mxu3 %v565_v54  ;;  %600 = vmatpush.msra.mxu0 %v551_v61  ;;  %v624_v19 = vld [vmem:[#allocation7 + $0x120] sm:$0xff]  ;;  %v623_v21 = vld [vmem:[#allocation7 + $0x118] sm:$0xff]  ;;  %v542_v22 = vld [vmem:[#allocation7 + $0x10] sm:$0xff] }
  0x50   : > { %468 = vmatpush.msrb.mxu1 %v408_v31  ;;  %v622_v23 = vld [vmem:[#allocation7 + $0x110] sm:$0xff]  ;;  %v541_v25 = vld [vmem:[#allocation7 + $0x8] sm:$0xff]  ;;  %v540_v27 = vld [vmem:[#allocation7] sm:$0xff] }
  0x51   : > { %1030 = vmatmul.msk.f32.gmra.mxu1 %vm421_vm1, %v381_v13  ;;  %581 = vmatpush.msra.mxu3 %v564_v57  ;;  %v626_v13 = vld [vmem:[#allocation7 + $0x130] sm:$0xff]  ;;  %v621_v26 = vld [vmem:[#allocation7 + $0x108] sm:$0xff]  ;;  %v620_v28 = vld [vmem:[#allocation7 + $0x100] sm:$0xff] }
  0x52   : > { %469 = vmatpush.msrb.mxu1 %v407_v36  ;;  %1034 = vmatmul.msk.f32.gmra.mxu2 %vm421_vm1, %v403_v38  ;;  %v713_v30 = vld [vmem:[#allocation8 + $0xf8] sm:$0xff]  ;;  %v712_v31 = vld [vmem:[#allocation8 + $0xf0] sm:$0xff]  ;;  %v711_v34 = vld [vmem:[#allocation8 + $0xe8] sm:$0xff] }
  0x53   : > { %582 = vmatpush.msra.mxu3 %v563_v60  ;;  %601 = vmatpush.msra.mxu0 %v550_v0  ;;  %v696_v35 = vld [vmem:[#allocation8 + $0x78] sm:$0xff]  ;;  %v695_v37 = vld [vmem:[#allocation8 + $0x70] sm:$0xff]  ;;  %v694_v42 = vld [vmem:[#allocation8 + $0x68] sm:$0xff] }
  0x54   : > { %470 = vmatpush.msrb.mxu1 %v406_v39  ;;  %714 = vmatpush.msrb.mxu2 %v713_v30  ;;  %v776_v36 = vld [vmem:[#allocation8 + $0x178] sm:$0xff]  ;;  %v775_v38 = vld [vmem:[#allocation8 + $0x170] sm:$0xff]  ;;  %v706_v54 = vld [vmem:[#allocation8 + $0xc0] sm:$0xff] }
  0x55   : > { %583 = vmatpush.msra.mxu3 %v562_v63  ;;  %602 = vmatpush.msra.mxu0 %v549_v3  ;;  %v709_v46 = vld [vmem:[#allocation8 + $0xd8] sm:$0xff]  ;;  %v708_v48 = vld [vmem:[#allocation8 + $0xd0] sm:$0xff]  ;;  %v1132_v41 = vld [vmem:[%s1665_s6] ss:$0 sm:$0xff] }
  0x56   : > { %471 = vmatpush.msrb.mxu1 %v405_v40  ;;  %715 = vmatpush.msrb.mxu2 %v712_v31  ;;  %v710_v40 = vld [vmem:[#allocation8 + $0xe0] sm:$0xff]  ;;  %v684_v30 = vld [vmem:[#allocation8 + $0x18] sm:$0xff] }
  0x57   : > { %584 = vmatpush.msra.mxu3 %v561_v2  ;;  %603 = vmatpush.msra.mxu0 %v548_v6  ;;  %v704_v6 = vld [vmem:[#allocation8 + $0xb0] sm:$0xff]  ;;  %v764_v31 = vld [vmem:[#allocation8 + $0x118] sm:$0xff] }
  0x58   : > { %472 = vmatpush.msrb.mxu1 %v404_v43  ;;  %716 = vmatpush.msrb.mxu2 %v711_v34  ;;  %v763_v34 = vld [vmem:[#allocation8 + $0x110] sm:$0xff] }
  0x59   : > { %1031 = vmatmul.msk.f32.vlgmr.msrb.gmra.mxu1 %vm421_vm1, %v391_v44  ;;  %585 = vmatpush.msra.mxu3 %v560_v5  ;;  %v1130_v44 = vld [vmem:[%s1661_s2] ss:$0 sm:$0xff] }
  0x5a   : > { %636 = vmatpush.msra.mxu1 %v635_v50  ;;  %604 = vmatpush.msra.mxu0 %v547_v9  ;;  %v707_v50 = vld [vmem:[#allocation8 + $0xc8] sm:$0xff]  ;;  %v773_v5 = vld [vmem:[#allocation8 + $0x160] sm:$0xff] }
  0x5b   : > { %586 = vmatpush.msra.mxu3 %v559_v8  ;;  %717 = vmatpush.msrb.mxu2 %v710_v40  ;;  %v772_v8 = vld [vmem:[#allocation8 + $0x158] sm:$0xff]  ;;  %v703_v9 = vld [vmem:[#allocation8 + $0xa8] sm:$0xff] }
  0x5c   : > { %637 = vmatpush.msra.mxu1 %v634_v52  ;;  %605 = vmatpush.msra.mxu0 %v546_v12  ;;  %v702_v12 = vld [vmem:[#allocation8 + $0xa0] sm:$0xff] }
  0x5d   : > { %587 = vmatpush.msra.mxu3 %v558_v11  ;;  %718 = vmatpush.msrb.mxu2 %v709_v46  ;;  %v771_v11 = vld [vmem:[#allocation8 + $0x150] sm:$0xff] }
  0x5e   : > { %638 = vmatpush.msra.mxu1 %v633_v56  ;;  %606 = vmatpush.msra.mxu0 %v545_v16  ;;  %v705_v56 = vld [vmem:[#allocation8 + $0xb8] sm:$0xff] }
  0x5f   : > { %588 = vmatpush.msra.mxu3 %v557_v15  ;;  %719 = vmatpush.msrb.mxu2 %v708_v48  ;;  %v770_v15 = vld [vmem:[#allocation8 + $0x148] sm:$0xff]  ;;  %v701_v16 = vld [vmem:[#allocation8 + $0x98] sm:$0xff] }
  0x60   : > { %639 = vmatpush.msra.mxu1 %v632_v59  ;;  %607 = vmatpush.msra.mxu0 %v544_v18  ;;  %v769_v18 = vld [vmem:[#allocation8 + $0x140] sm:$0xff] }
  0x61   : > { %1032 = vmatmul.msk.f32.gmra.mxu1 %vm421_vm1, %v385_v45  ;;  %737 = vmatpush.msrb.mxu3 %v696_v35  ;;  %v774_v45 = vld [vmem:[#allocation8 + $0x168] sm:$0xff] }
  0x62   : > { %640 = vmatpush.msra.mxu1 %v631_v62  ;;  %608 = vmatpush.msra.mxu0 %v543_v20  ;;  %v688_v20 = vld [vmem:[#allocation8 + $0x38] sm:$0xff]  ;;  %v682_v35 = vld [vmem:[#allocation8 + $0x8] sm:$0xff] }
  0x63   : > { %738 = vmatpush.msrb.mxu3 %v695_v37  ;;  %720 = vmatpush.msrb.mxu2 %v707_v50  ;;  %v681_v37 = vld [vmem:[#allocation8] sm:$0xff] }
  0x64   : > { %641 = vmatpush.msra.mxu1 %v630_v1  ;;  %609 = vmatpush.msra.mxu0 %v542_v22  ;;  %v699_v22 = vld [vmem:[#allocation8 + $0x88] sm:$0xff] }
  0x65   : > { %739 = vmatpush.msrb.mxu3 %v694_v42  ;;  %721 = vmatpush.msrb.mxu2 %v706_v54 }
  0x66   : > { %642 = vmatpush.msra.mxu1 %v629_v4  ;;  %610 = vmatpush.msra.mxu0 %v541_v25  ;;  %v693_v4 = vld [vmem:[#allocation8 + $0x60] sm:$0xff] }
  0x67   : > { %722 = vmatpush.msrb.mxu2 %v705_v56  ;;  %740 = vmatpush.msrb.mxu3 %v693_v4  ;;  %v698_v25 = vld [vmem:[#allocation8 + $0x80] sm:$0xff] }
  0x68   : > { %643 = vmatpush.msra.mxu1 %v628_v7  ;;  %611 = vmatpush.msra.mxu0 %v540_v27  ;;  %v692_v7 = vld [vmem:[#allocation8 + $0x58] sm:$0xff]  ;;  %v766_v27 = vld [vmem:[#allocation8 + $0x128] sm:$0xff] }
  0x69   : > { %723 = vmatpush.msrb.mxu2 %v704_v6  ;;  %741 = vmatpush.msrb.mxu3 %v692_v7 }
  0x6a   : > { %644 = vmatpush.msra.mxu1 %v627_v10  ;;  %777 = vmatpush.msrb.mxu0 %v776_v36  ;;  %v691_v10 = vld [vmem:[#allocation8 + $0x50] sm:$0xff]  ;;  %v762_v36 = vld [vmem:[#allocation8 + $0x108] sm:$0xff] }
  0x6b   : > { %724 = vmatpush.msrb.mxu2 %v703_v9  ;;  %742 = vmatpush.msrb.mxu3 %v691_v10 }
  0x6c   : > { %645 = vmatpush.msra.mxu1 %v626_v13  ;;  %778 = vmatpush.msrb.mxu0 %v775_v38  ;;  %v690_v13 = vld [vmem:[#allocation8 + $0x48] sm:$0xff]  ;;  %v761_v38 = vld [vmem:[#allocation8 + $0x100] sm:$0xff] }
  0x6d   : > { %725 = vmatpush.msrb.mxu2 %v702_v12  ;;  %743 = vmatpush.msrb.mxu3 %v690_v13 }
  0x6e   : > { %646 = vmatpush.msra.mxu1 %v625_v17  ;;  %779 = vmatpush.msrb.mxu0 %v774_v45  ;;  %v689_v17 = vld [vmem:[#allocation8 + $0x40] sm:$0xff] }
  0x6f   : > { %726 = vmatpush.msrb.mxu2 %v701_v16  ;;  %744 = vmatpush.msrb.mxu3 %v689_v17 }
  0x70   : > { %647 = vmatpush.msra.mxu1 %v624_v19  ;;  %780 = vmatpush.msrb.mxu0 %v773_v5  ;;  %v700_v19 = vld [vmem:[#allocation8 + $0x90] sm:$0xff] }
  0x71   : > { %727 = vmatpush.msrb.mxu2 %v700_v19  ;;  %745 = vmatpush.msrb.mxu3 %v688_v20 }
  0x72   : > { %648 = vmatpush.msra.mxu1 %v623_v21  ;;  %781 = vmatpush.msrb.mxu0 %v772_v8  ;;  %v768_v21 = vld [vmem:[#allocation8 + $0x138] sm:$0xff] }
  0x73   : > { %728 = vmatpush.msrb.mxu2 %v699_v22 }
  0x74   : > { %649 = vmatpush.msra.mxu1 %v622_v23  ;;  %782 = vmatpush.msrb.mxu0 %v771_v11  ;;  %v687_v23 = vld [vmem:[#allocation8 + $0x30] sm:$0xff] }
  0x75   : > { %746 = vmatpush.msrb.mxu3 %v687_v23  ;;  %729 = vmatpush.msrb.mxu2 %v698_v25 }
  0x76   : > { %650 = vmatpush.msra.mxu1 %v621_v26  ;;  %783 = vmatpush.msrb.mxu0 %v770_v15  ;;  %v686_v26 = vld [vmem:[#allocation8 + $0x28] sm:$0xff] }
  0x77   : > { %747 = vmatpush.msrb.mxu3 %v686_v26 }
  0x78   : > { %651 = vmatpush.msra.mxu1 %v620_v28  ;;  %784 = vmatpush.msrb.mxu0 %v769_v18  ;;  %v685_v28 = vld [vmem:[#allocation8 + $0x20] sm:$0xff] }
  0x79   : > { %748 = vmatpush.msrb.mxu3 %v685_v28 }
  0x7a   : > { %785 = vmatpush.msrb.mxu0 %v768_v21 }
  0x7b   : > { %749 = vmatpush.msrb.mxu3 %v684_v30 }
  0xc6   : > { %v445_v24 = vpop.f32.mrf.mxu1 }
  0xcd   : > { %v512_v33 = vpop.f32.mrf.mxu2 }
  0xce   : > { %v448_v29 = vpop.f32.mrf.mxu1 }
  0xd5   : > { %v515_v53 = vpop.f32.mrf.mxu2 }
  0xd6   : > { %v474_v39 = vpop.f32.mrf.mxu1 }
  0xd7   : > { %v475_v43 = vadd.f32 %v474_v39, %v445_v24  ;;  %v767_v24 = vld [vmem:[#allocation8 + $0x130] sm:$0xff] }
  0xd8   : > { %786 = vmatpush.msrb.mxu0 %v767_v24 }
  0xd9   : > { %v518_v47 = vadd.f32 %v512_v33, %v475_v43  ;;  %v683_v33 = vld [vmem:[#allocation8 + $0x10] sm:$0xff] }
  0xda   : > { %787 = vmatpush.msrb.mxu0 %v766_v27  ;;  %750 = vmatpush.msrb.mxu3 %v683_v33 }
  0xdb   : > { %v524_v49 = vadd.f32 %v1130_v44, %v518_v47 }
  0xdc   : > { %751 = vmatpush.msrb.mxu3 %v682_v35 }
  0xdd   : > { %v1565_v51 = vmax.f32 %v524_v49, 0.0 }
  0xde   : > { %v477_v52 = vpop.f32.mrf.mxu1  ;;  %752 = vmatpush.msrb.mxu3 %v681_v37 }
  0xdf   : > { %v478_v55 = vadd.f32 %v477_v52, %v448_v29  ;;  %589 = vmatmul.f32.vlgmr.msra.gmra.mxu3 %v1565_v51  ;;  %v528_v60 = vrot.slane %v1565_v51, 7  ;;  %v534_v62 = vrot.slane %v1565_v51, 1  ;;  %v765_v29 = vld [vmem:[#allocation8 + $0x120] sm:$0xff] }
  0xe0   : > { %788 = vmatpush.msrb.mxu0 %v765_v29 }
  0xe1   : > { %v519_v57 = vadd.f32 %v515_v53, %v478_v55 }
  0xe2   : > { %789 = vmatpush.msrb.mxu0 %v764_v31 }
  0xe3   : > { %v525_v58 = vadd.f32 %v1130_v44, %v519_v57  ;;  %v1131_v44 = vld [vmem:[%s1663_s4] ss:$0 sm:$0xff] }
  0xe4   : > { %790 = vmatpush.msrb.mxu0 %v763_v34 }
  0xe5   : > { %v1568_v59 = vmax.f32 %v525_v58, 0.0 }
  0xe6   : > { %791 = vmatpush.msrb.mxu0 %v762_v36 }
  0xe7   : > { %592 = vmatmul.f32.gmra.mxu3 %v1568_v59  ;;  %v529_v61 = vrot.slane %v1568_v59, 7  ;;  %v535_v63 = vrot.slane %v1568_v59, 1 }
  0xe8   : > { %792 = vmatpush.msrb.mxu0 %v761_v38 }
  0xe9   : > { %v531_v0 = vsel %vm384_vm3, %v529_v61, %v528_v60  ;;  %v536_v1 = vsel %vm395_vm0, %v534_v62, %v535_v63  ;;  %v530_v2 = vsel %vm384_vm3, %v528_v60, %v529_v61  ;;  %v537_v3 = vsel %vm395_vm0, %v535_v63, %v534_v62 }
  0xea   : > { %1035 = vmatmul.msk.f32.vlgmr.msra.gmra.mxu0 %vm1549_vm4, %v531_v0  ;;  %652 = vmatmul.f32.vlgmr.msra.gmra.mxu1 %v536_v1 }
  0xf2   : > { %615 = vmatmul.f32.gmra.mxu0 %v530_v2  ;;  %1036 = vmatmul.msk.f32.gmra.mxu1 %vm1538_vm2, %v537_v3 }
 0x162   : > { %v590_v39 = vpop.f32.mrf.mxu3 }
 0x167   : > { %v613_v40 = vpop.f32.mrf.mxu0  ;;  %v653_v42 = vpop.f32.mrf.mxu1 }
 0x168   : > { %v614_v43 = vadd.f32 %v613_v40, %v590_v39 }
 0x16a   : > { %v659_v45 = vadd.f32 %v653_v42, %v614_v43  ;;  %v593_v48 = vpop.f32.mrf.mxu3 }
 0x16c   : > { %v665_v46 = vadd.f32 %v1131_v44, %v659_v45 }
 0x16e   : > { %v667_v47 = vmax.f32 %v665_v46, 0.0 }
 0x16f   : > { %v616_v49 = vpop.f32.mrf.mxu0  ;;  %v656_v52 = vpop.f32.mrf.mxu1 }
 0x170   : > { %v617_v50 = vadd.f32 %v616_v49, %v593_v48  ;;  %730 = vmatmul.f32.vlgmr.msrb.gmra.mxu2 %v667_v47  ;;  %v669_v56 = vrot.slane %v667_v47, 7  ;;  %v675_v58 = vrot.slane %v667_v47, 1 }
 0x172   : > { %v660_v53 = vadd.f32 %v656_v52, %v617_v50 }
 0x174   : > { %v666_v54 = vadd.f32 %v1131_v44, %v660_v53 }
 0x176   : > { %v668_v55 = vmax.f32 %v666_v54, 0.0 }
 0x178   : > { %v670_v57 = vrot.slane %v668_v55, 7  ;;  %733 = vmatmul.f32.gmra.mxu2 %v668_v55  ;;  %v676_v60 = vrot.slane %v668_v55, 1 }
 0x17a   : > { %v672_v61 = vsel %vm384_vm3, %v670_v57, %v669_v56  ;;  %v677_v62 = vsel %vm395_vm0, %v675_v58, %v676_v60  ;;  %v671_v63 = vsel %vm384_vm3, %v669_v56, %v670_v57  ;;  %v678_v0 = vsel %vm395_vm0, %v676_v60, %v675_v58 }
 0x17b   : > { %1037 = vmatmul.msk.f32.vlgmr.msrb.gmra.mxu3 %vm1549_vm4, %v672_v61  ;;  %793 = vmatmul.f32.vlgmr.msrb.gmra.mxu0 %v677_v62 }
 0x183   : > { %756 = vmatmul.f32.gmra.mxu3 %v671_v63  ;;  %1038 = vmatmul.msk.f32.gmra.mxu0 %vm1538_vm2, %v678_v0 }
 0x1f3   : > { %v731_v1 = vpop.f32.mrf.mxu2 }
 0x1f8   : > { %v794_v2 = vpop.f32.mrf.mxu0 }
 0x1fb   : > { %v734_v7 = vpop.f32.mrf.mxu2 }
 0x1fe   : > { %v754_v3 = vpop.f32.mrf.mxu3 }
 0x1ff   : > { %v755_v4 = vadd.f32 %v754_v3, %v731_v1 }
 0x200   : > { %v797_v9 = vpop.f32.mrf.mxu0 }
 0x201   : > { %v800_v5 = vadd.f32 %v794_v2, %v755_v4 }
 0x203   : > { %v806_v6 = vadd.f32 %v1132_v41, %v800_v5 }
 0x205   : > { %808 = vrot.lane.b32.xlu0 %v806_v6, %s1342_s22 }
 0x206   : > { %v757_v14 = vpop.f32.mrf.mxu3 }
 0x207   : > { %v758_v8 = vadd.f32 %v757_v14, %v734_v7 }
 0x209   : > { %v801_v10 = vadd.f32 %v797_v9, %v758_v8 }
 0x20b   : > { %v807_v32 = vadd.f32 %v1132_v41, %v801_v10 }
 0x20d   : > { %810 = vrot.lane.b32.xlu0 %v807_v32, %s1342_s22 }
 0x277   : > { %v809_v11 = vpop.permute.xlu0 %808 }
 0x278   : > { %v812_v12 = vmax.f32 %v806_v6, %v809_v11 }
 0x27a   : > { %814 = vrot.lane.b32.xlu1 %v812_v12, %s1343_s29 }
 0x27f   : > { %v811_v13 = vpop.permute.xlu0 %810 }
 0x280   : > { %v813_v15 = vmax.f32 %v807_v32, %v811_v13 }
 0x282   : > { %816 = vrot.lane.b32.xlu1 %v813_v15, %s1343_s29 }
 0x2ec   : > { %v815_v16 = vpop.permute.xlu1 %814 }
 0x2ed   : > { %v818_v17 = vmax.f32 %v812_v12, %v815_v16 }
 0x2ef   : > { %820 = vrot.lane.b32.xlu2 %v818_v17, %s1344_s9 }
 0x2f4   : > { %v817_v18 = vpop.permute.xlu1 %816 }
 0x2f5   : > { %v819_v19 = vmax.f32 %v813_v15, %v817_v18 }
 0x2f7   : > { %822 = vrot.lane.b32.xlu2 %v819_v19, %s1344_s9 }
 0x349   : > { %v821_v20 = vpop.permute.xlu2 %820 }
 0x34a   : > { %v824_v21 = vmax.f32 %v818_v17, %v821_v20 }
 0x34c   : > { %826 = vrot.lane.b32.xlu0 %v824_v21, %s1345_s21 }
 0x351   : > { %v823_v22 = vpop.permute.xlu2 %822 }
 0x352   : > { %v825_v23 = vmax.f32 %v819_v19, %v823_v22 }
 0x354   : > { %828 = vrot.lane.b32.xlu1 %v825_v23, %s1345_s21 }
 0x3be   : > { %v827_v24 = vpop.permute.xlu0 %826 }
 0x3bf   : > { %v830_v25 = vmax.f32 %v824_v21, %v827_v24 }
 0x3c1   : > { %v832_v26 = vsub.f32 %v806_v6, %v830_v25 }
 0x3c3   : > { %v834_v27 = vmul.f32 1.442695, %v832_v26 }
 0x3c5   : > { %1133 = vpow2.f32 %v834_v27 }
 0x3c6   : > { %v829_v28 = vpop.permute.xlu1 %828 }
 0x3c7   : > { %v831_v29 = vmax.f32 %v825_v23, %v829_v28 }
 0x3c9   : > { %v833_v30 = vsub.f32 %v807_v32, %v831_v29 }
 0x3cb   : > { %v1134_v31 = vpop.eup %1133  ;;  %v836_v33 = vmul.f32 1.442695, %v833_v30 }
 0x3cc   : > { %838 = vrot.lane.b32.xlu2 %v1134_v31, %s1342_s22 }
 0x3cd   : > { %1135 = vpow2.f32 %v836_v33 }
 0x3d3   : > { %v1136_v34 = vpop.eup %1135 }
 0x3d4   : > { %840 = vrot.lane.b32.xlu0 %v1136_v34, %s1342_s22 }
 0x426   : > { %v839_v35 = vpop.permute.xlu2 %838 }
 0x427   : > { %v842_v36 = vadd.f32 %v1134_v31, %v839_v35 }
 0x429   : > { %844 = vrot.lane.b32.xlu1 %v842_v36, %s1343_s29 }
 0x446   : > { %v841_v37 = vpop.permute.xlu0 %840 }
 0x447   : > { %v843_v38 = vadd.f32 %v1136_v34, %v841_v37 }
 0x449   : > { %846 = vrot.lane.b32.xlu2 %v843_v38, %s1343_s29 }
 0x49b   : > { %v845_v39 = vpop.permute.xlu1 %844 }
 0x49c   : > { %v848_v40 = vadd.f32 %v845_v39, %v842_v36 }
 0x49e   : > { %850 = vrot.lane.b32.xlu0 %v848_v40, %s1344_s9 }
 0x4a3   : > { %v847_v42 = vpop.permute.xlu2 %846 }
 0x4a4   : > { %v849_v43 = vadd.f32 %v847_v42, %v843_v38 }
 0x4a6   : > { %852 = vrot.lane.b32.xlu1 %v849_v43, %s1344_s9  ;;  %s1281_s9 = scalar_lea.hbm %s1666_s7, 32 }
 0x4a7   : > { %p1283_p9 = scmp.lt.s32.totalorder %s1281_s9, %s1277_s14 }
 0x4a9   : > { %p1284_p2 = por %p1283_p9, %p1282_p11 }
 0x4ab   : > { %p1285_p10 = pnand %p1284_p2, %p1280_p8 }
 0x510   : > { %v851_v44 = vpop.permute.xlu0 %850 }
 0x511   : > { %v854_v45 = vadd.f32 %v851_v44, %v848_v40 }
 0x513   : > { %856 = vrot.lane.b32.xlu2 %v854_v45, %s1345_s21 }
 0x518   : > { %v853_v46 = vpop.permute.xlu1 %852 }
 0x519   : > { %v855_v47 = vadd.f32 %v853_v46, %v849_v43 }
 0x51b   : > { %858 = vrot.lane.b32.xlu0 %v855_v47, %s1345_s21 }
 0x56d   : > { %v857_v48 = vpop.permute.xlu2 %856 }
 0x56e   : > { %v860_v49 = vadd.f32 %v857_v48, %v854_v45 }
 0x570   : > { %1137 = vrcp.f32 %v860_v49  ;;  %v873_v54 = vand.u32 2147483648, %v860_v49  ;;  %v871_v56 = vand.u32 2147483647, %v860_v49  ;;  %vm867_vm6 = vweird.f32 %v860_v49 }
 0x572   : > { %v874_v58 = vor.u32 1.1754944e-38, %v873_v54  ;;  %vm872_vm8 = vcmp.eq.f32.partialorder %v871_v56, 8.507059e+37 }
 0x576   : > { %v1138_v50 = vpop.eup %1137 }
 0x577   : > { %v863_v52 = vmul.f32 %v1138_v50, %v860_v49  ;;  %vm868_vm5 = vweird.f32 %v1138_v50 }
 0x578   : > { %vm869_vm7 = vmor %vm867_vm6, %vm868_vm5 }
 0x579   : > { %v864_v53 = vsub.f32 1.0, %v863_v52 }
 0x57b   : > { %v865_v55 = vmul.f32 %v1138_v50, %v864_v53 }
 0x57d   : > { %v866_v57 = vadd.f32 %v1138_v50, %v865_v55 }
 0x57f   : > { %v870_v60 = vsel %vm869_vm7, %v1138_v50, %v866_v57 }
 0x580   : > { %v875_v61 = vsel %vm872_vm8, %v874_v58, %v870_v60 }
 0x581   : > { %v876_v62 = vmul.f32 %v1134_v31, %v875_v61 }
 0x583   : > { %v892_v63 = vmul.f32 %v876_v62, %v1565_v51 }
 0x585   : > { %894 = vst [vmem:[%s348_s11] sm:$0xff] %v892_v63 }
 0x58d   : > { %v859_v0 = vpop.permute.xlu0 %858 }
 0x58e   : > { %v861_v1 = vadd.f32 %v859_v0, %v855_v47 }
 0x590   : > { %1139 = vrcp.f32 %v861_v1  ;;  %v888_v41 = vand.u32 2147483648, %v861_v1  ;;  %v886_v6 = vand.u32 2147483647, %v861_v1  ;;  %vm882_vm10 = vweird.f32 %v861_v1 }
 0x592   : > { %v889_v51 = vor.u32 1.1754944e-38, %v888_v41  ;;  %vm887_vm12 = vcmp.eq.f32.partialorder %v886_v6, 8.507059e+37 }
 0x596   : > { %v1140_v2 = vpop.eup %1139 }
 0x597   : > { %v878_v3 = vmul.f32 %v1140_v2, %v861_v1  ;;  %vm883_vm9 = vweird.f32 %v1140_v2 }
 0x598   : > { %vm884_vm11 = vmor %vm882_vm10, %vm883_vm9 }
 0x599   : > { %v879_v4 = vsub.f32 1.0, %v878_v3 }
 0x59b   : > { %v880_v5 = vmul.f32 %v1140_v2, %v879_v4 }
 0x59d   : > { %v881_v7 = vadd.f32 %v1140_v2, %v880_v5 }
 0x59f   : > { %v885_v14 = vsel %vm884_vm11, %v1140_v2, %v881_v7 }
 0x5a0   : > { %v890_v8 = vsel %vm887_vm12, %v889_v51, %v885_v14 }
 0x5a1   : > { %v891_v9 = vmul.f32 %v1136_v34, %v890_v8 }
 0x5a3   : > { %v893_v10 = vmul.f32 %v891_v9, %v1568_v59 }
 0x5a5   : > { %895 = vst [vmem:[%s348_s11 + $0x8] sm:$0xff] %v893_v10 }
 0x5a6   : > { %1288 = shalt.err (!%p1285_p10)
}
 0x5a7   : > { %s1346_s15 = smov 128  }
 0x5a8   : > { %1060 = dma.vmem_to_hbm [thread:$0]  (%p1478_p3), %s910_s1, 256, %s912_s19, %s897_s28, %s1346_s15, %s1346_s15, %s1342_s22  }
 0x5a9 PF: > { %s926_s11 = sand.u32 1, %s1323_s24   ;;  %p1683_p12 = scmp.ge.s32.totalorder %s1335_s27, 2 }
 0x5aa   : > { %s927_s23 = scalar_lea.sflag [#allocation4], %s926_s11 }
 0x5ab   : > { %p1077_p13 = pnand %p1683_p12, %p1422_p6 }
 0x5ad   : > { %p1078_p0 = pneg %p1077_p13 }
 0x5af   : > { %1318 = dma.done.wait (%p1078_p0), %s927_s23, 256  }
 0x5b0   : > { %1320 = vsyncadd (%p1078_p0), %s927_s23, 4294967040  ;;  %p22_p5 = scmp.ge.s32.totalorder %s1460_s13, 4   ;;  %s1684_s24 = smov %s1327_s25 }
 0x5b1   : > { %s1685_s25 = smov %s1331_s26  ;;  %s1686_s26 = smov %s1474_s17 }
 0x5b2   : > { %s1687_s27 = smov %s1460_s13  ;;  %24 = sbr.rel (!%p22_p5) target bundleno = 9 (0x9), region = 111 }
 0x5b7   :  { %933 = vsyncpa [#allocation3], 1 }
 0x5b8   :  { %935 = vsyncpa [#allocation3 + $0x1], 1 }
 0x5b9   :  { %936 = vsyncpa [#allocation6], 1 }
 0x5ba   :  { %937 = vsyncpa [#allocation9], 1 }
 0x5bb   :  { %938 = vsyncpa [#allocation4], 1 }
 0x5bc   :  { %940 = vsyncpa [#allocation4 + $0x1], 1 }

</bundles_post_ra>
